<compile_context>
chip_gen: v5e
topology: v5e:2x2
jax: 0.10.0
libtpu: 0.0.40
codegen_flags: <defaults>
</compile_context>

<pallas_src>
import functools

import jax
import jax.numpy as jnp
from jax.experimental import pallas as pl
from jax.experimental.pallas import tpu as pltpu


def _tv_kernel(x_ref, hmask_ref, wmask_ref, out_ref, *,
               w, hw, p, ch, n, needs_tail, inv_h, inv_w):
    # x_ref:     (P, H*W) block of flattened planes (native dtype)
    # hmask_ref: (1, H*W) native dtype, 1 where the "row below" neighbor is in-plane
    # wmask_ref: (1, H*W) native dtype, 1 where the "col right" neighbor is in-plane
    # out_ref:   (1, 1, 128) f32 combined partial (h_tv/count_h + w_tv/count_w)
    pid = pl.program_id(0)
    num_chunks = p // ch

    hm = hmask_ref[...]
    wm = wmask_ref[...]

    def chunk_body(c, carry):
        h_acc, w_acc = carry
        start = pl.multiple_of(c * ch, ch)
        x = x_ref[pl.ds(start, ch), :]                       # (ch, hw)
        if needs_tail:
            # Zero out rows past the real plane count (tail of the last block).
            row = jax.lax.broadcasted_iota(jnp.int32, (ch, 1), 0)
            valid = (pid * p + start + row) < n
            x = jnp.where(valid, x, jnp.zeros_like(x))
        # Neighbor "below" (offset +W) and "right" (offset +1) via lane
        # rotation (XLU slot); wrapped positions are zeroed by the 0/1 masks.
        x_down = pltpu.roll(x, shift=hw - w, axis=1)         # x[(i + W) % HW]
        x_right = pltpu.roll(x, shift=hw - 1, axis=1)        # x[(i + 1) % HW]
        dh = (x_down - x) * hm       # mask in native dtype (0/1 -> exact)
        dw = (x_right - x) * wm
        dhf = dh.astype(jnp.float32)
        dwf = dw.astype(jnp.float32)
        h_acc = h_acc + jnp.sum(dhf * dhf)
        w_acc = w_acc + jnp.sum(dwf * dwf)
        return h_acc, w_acc

    h_acc, w_acc = jax.lax.fori_loop(
        0, num_chunks, chunk_body,
        (jnp.float32(0.0), jnp.float32(0.0)), unroll=True)

    combined = h_acc * inv_h + w_acc * inv_w                 # scalar math: free
    out_ref[...] = jnp.full((1, 1, 128), combined, dtype=jnp.float32)


def tv_loss(x, tv_loss_weight=1.0):
    """Total variation loss matching the PyTorch TVLoss.forward semantics.

    x: [B, C, H, W] array (any float dtype; accumulation in f32).
    returns: scalar float32.
    """
    b, c, h, w = x.shape
    n = b * c
    hw = h * w
    itemsize = jnp.dtype(x.dtype).itemsize
    plane_bytes = hw * itemsize

    TEMP_BUDGET = 2 << 20    # in-kernel temporaries per sublane chunk
    BLOCK_TARGET = 6 << 20   # per DMA input block (pipeline double-buffers it)

    # Chunk rows processed per inner-loop iteration (bounds roll/diff temps).
    temp_per_row = hw * (5 * itemsize + 8)
    ch = max(8, min(1024, (TEMP_BUDGET // temp_per_row) // 8 * 8))

    if n <= ch:
        if n >= 16:
            # Split into two blocks so both v7x TensorCores get work.
            p = min(n, (((n + 1) // 2) + 7) // 8 * 8)
        else:
            p = n            # full-dim block satisfies the (8,128) rule
        ch_k = p             # single chunk per block
    else:
        rows_target = max(ch, (BLOCK_TARGET // plane_bytes) // ch * ch)
        half = -(-((n + 1) // 2) // ch) * ch      # >= 2 blocks when possible
        p = max(ch, min(rows_target, half))
        if n % p != 0:
            # Prefer an exactly-dividing block size near the target: skips the
            # in-kernel tail mask (and the original full-array pad copy).
            for cand in range(p, max(ch, p // 2) - 1, -ch):
                if n % cand == 0:
                    p = cand
                    break
        ch_k = ch

    num_blocks = -(-n // p)
    needs_tail = (n % p) != 0

    # Lane-dense layout: one flattened plane per row (no data copy, pure view).
    x_planes = x.reshape(n, hw)

    # Precomputed 0/1 boundary masks in the input dtype (exact; applied
    # pre-cast so bf16 inputs keep the multiply on packed VPU lanes).
    idx = jnp.arange(hw, dtype=jnp.int32)
    h_mask = (idx < (h - 1) * w).astype(x.dtype).reshape(1, hw)
    w_mask = ((idx % w) != (w - 1)).astype(x.dtype).reshape(1, hw)

    count_h = c * (h - 1) * w    # numel of x[:, :, 1:, :] per batch element
    count_w = c * h * (w - 1)    # numel of x[:, :, :, 1:] per batch element
    inv_h = (1.0 / count_h) if count_h > 0 else float("inf")
    inv_w = (1.0 / count_w) if count_w > 0 else float("inf")

    # VMEM budget from actual usage: 2x double-buffered input block + chunk
    # temporaries + masks + output, capped at 48 MiB (below v7x physical).
    block_in = p * hw * itemsize
    temp_bytes = ch_k * hw * (5 * itemsize + 8)
    vmem_needed = 2 * block_in + temp_bytes + 4 * hw * itemsize + 1024 + (1 << 20)
    vmem_limit = int(min(48 << 20, max(vmem_needed, 4 << 20)))
    # TODO(synk): for very large planes (>= ~3 MiB each) the minimum 8-plane
    # block can exceed the v7x 48 MiB budget; add an H*W-axis grid split with a
    # one-row halo for the h-direction diff in that regime.

    partials = pl.pallas_call(
        functools.partial(_tv_kernel, w=w, hw=hw, p=p, ch=ch_k, n=n,
                          needs_tail=needs_tail, inv_h=inv_h, inv_w=inv_w),
        out_shape=jax.ShapeDtypeStruct((num_blocks, 1, 128), jnp.float32),
        grid=(num_blocks,),
        in_specs=[
            pl.BlockSpec((p, hw), lambda i: (i, 0)),
            pl.BlockSpec((1, hw), lambda i: (0, 0)),
            pl.BlockSpec((1, hw), lambda i: (0, 0)),
        ],
        out_specs=pl.BlockSpec((1, 1, 128), lambda i: (i, 0, 0)),
        compiler_params=pltpu.CompilerParams(
            dimension_semantics=("parallel",),
            vmem_limit_bytes=vmem_limit,
        ),
    )(x_planes, h_mask, w_mask)

    total = jnp.sum(partials[:, 0, 0])
    return jnp.float32(2.0 * float(tv_loss_weight) / b) * total


def tv_loss_ref(x, tv_loss_weight=1.0):
    """Pure-JAX reference (mirrors the PyTorch code)."""
    b, c, h, w = x.shape
    xf = x.astype(jnp.float32)
    count_h = c * (h - 1) * w
    count_w = c * h * (w - 1)
    h_tv = jnp.sum((xf[:, :, 1:, :] - xf[:, :, :h - 1, :]) ** 2)
    w_tv = jnp.sum((xf[:, :, :, 1:] - xf[:, :, :, :w - 1]) ** 2)
    return tv_loss_weight * 2.0 * (h_tv / count_h + w_tv / count_w) / b


if __name__ == "__main__":
    key = jax.random.PRNGKey(0)
    x = jax.random.normal(key, (2, 4, 16, 16), dtype=jnp.float32)

    out = jax.block_until_ready(tv_loss(x, tv_loss_weight=1.0))
    ref = jax.block_until_ready(tv_loss_ref(x, tv_loss_weight=1.0))

    assert jnp.allclose(out, ref, rtol=1e-5, atol=1e-5), (out, ref)
    print("KERNEL_OK")
</pallas_src>

<mosaic_0001>
module attributes {stable_mosaic.version = 11 : i64} {
  func.func @_tv_kernel(%arg0: i32, %arg1: memref<8x256xf32, #tpu.memory_space<vmem>>, %arg2: memref<1x256xf32, #tpu.memory_space<vmem>>, %arg3: memref<1x256xf32, #tpu.memory_space<vmem>>, %arg4: memref<1x1x128xf32, #tpu.memory_space<vmem>>) attributes {dimension_semantics = [#tpu.dimension_semantics<parallel>], iteration_bounds = array<i64: 1>, scalar_prefetch = 0 : i64, scratch_operands = 0 : i64, tpu.core_type = #tpu.core_type<tc>, window_params = [{transform_indices = @transform_0, window_bounds = array<i64: 8, 256>}, {pipeline_mode = #tpu.pipeline_mode<synchronous>, transform_indices = @transform_1, window_bounds = array<i64: 1, 256>}, {pipeline_mode = #tpu.pipeline_mode<synchronous>, transform_indices = @transform_2, window_bounds = array<i64: 1, 256>}, {transform_indices = @transform_3, window_bounds = array<i64: 1, 1, 128>}]} {
    %c0 = arith.constant 0 : index
    %c0_0 = arith.constant 0 : index
    %0 = vector.load %arg2[%c0, %c0_0] : memref<1x256xf32, #tpu.memory_space<vmem>>, vector<1x256xf32>
    %c0_1 = arith.constant 0 : index
    %c0_2 = arith.constant 0 : index
    %1 = vector.load %arg3[%c0_1, %c0_2] : memref<1x256xf32, #tpu.memory_space<vmem>>, vector<1x256xf32>
    %cst = arith.constant 0.000000e+00 : f32
    %cst_3 = arith.constant 0.000000e+00 : f32
    %c0_i32 = arith.constant 0 : i32
    %c8_i32 = arith.constant 8 : i32
    %2 = arith.muli %c0_i32, %c8_i32 : i32
    %3 = tpu.assume_multiple %2, 8 : i32
    %4 = arith.index_cast %3 : i32 to index
    %c0_4 = arith.constant 0 : index
    %5 = vector.load %arg1[%4, %c0_4] : memref<8x256xf32, #tpu.memory_space<vmem>>, vector<8x256xf32>
    %c240_i32 = arith.constant 240 : i32
    %6 = tpu.dynamic_rotate %5 by %c240_i32 dim 1 : vector<8x256xf32>, i32 -> vector<8x256xf32>
    %c255_i32 = arith.constant 255 : i32
    %7 = tpu.dynamic_rotate %5 by %c255_i32 dim 1 : vector<8x256xf32>, i32 -> vector<8x256xf32>
    %8 = arith.subf %6, %5 : vector<8x256xf32>
    %9 = vector.broadcast %0 : vector<1x256xf32> to vector<8x256xf32>
    %10 = arith.mulf %8, %9 : vector<8x256xf32>
    %11 = arith.subf %7, %5 : vector<8x256xf32>
    %12 = vector.broadcast %1 : vector<1x256xf32> to vector<8x256xf32>
    %13 = arith.mulf %11, %12 : vector<8x256xf32>
    %14 = arith.mulf %10, %10 : vector<8x256xf32>
    %15 = vector.shape_cast %14 : vector<8x256xf32> to vector<1x8x256xf32>
    %cst_5 = arith.constant dense<0.000000e+00> : vector<1xf32>
    %16 = vector.multi_reduction <add>, %15, %cst_5 [1, 2] : vector<1x8x256xf32> to vector<1xf32>
    %17 = vector.shape_cast %16 : vector<1xf32> to vector<1x1x1xf32>
    %18 = vector.extract %17[0, 0, 0] : f32 from vector<1x1x1xf32>
    %19 = arith.addf %cst, %18 : f32
    %20 = arith.mulf %13, %13 : vector<8x256xf32>
    %21 = vector.shape_cast %20 : vector<8x256xf32> to vector<1x8x256xf32>
    %cst_6 = arith.constant dense<0.000000e+00> : vector<1xf32>
    %22 = vector.multi_reduction <add>, %21, %cst_6 [1, 2] : vector<1x8x256xf32> to vector<1xf32>
    %23 = vector.shape_cast %22 : vector<1xf32> to vector<1x1x1xf32>
    %24 = vector.extract %23[0, 0, 0] : f32 from vector<1x1x1xf32>
    %25 = arith.addf %cst_3, %24 : f32
    %c1_i32 = arith.constant 1 : i32
    %cst_7 = arith.constant 0.00104166672 : f32
    %26 = arith.mulf %19, %cst_7 : f32
    %cst_8 = arith.constant 0.00104166672 : f32
    %27 = arith.mulf %25, %cst_8 : f32
    %28 = arith.addf %26, %27 : f32
    %29 = vector.broadcast %28 : f32 to vector<1x1x128xf32>
    %c0_9 = arith.constant 0 : index
    %c0_10 = arith.constant 0 : index
    %c0_11 = arith.constant 0 : index
    %30 = vector.load %arg4[%c0_9, %c0_10, %c0_11] : memref<1x1x128xf32, #tpu.memory_space<vmem>>, vector<1x1x128xf32>
    tpu.vector_store %arg4[%c0_9, %c0_10, %c0_11], %29 {strides = array<i32>} : memref<1x1x128xf32, #tpu.memory_space<vmem>>, vector<1x1x128xf32>,
    return
  }
  func.func @transform_0(%arg0: i32) -> (i32, i32) {
    %c0_i32 = arith.constant 0 : i32
    %c0_i32_0 = arith.constant 0 : i32
    return %arg0, %c0_i32 : i32, i32
  }
  func.func @transform_1(%arg0: i32) -> (i32, i32) {
    %c0_i32 = arith.constant 0 : i32
    %c0_i32_0 = arith.constant 0 : i32
    %c0_i32_1 = arith.constant 0 : i32
    return %c0_i32, %c0_i32_0 : i32, i32
  }
  func.func @transform_2(%arg0: i32) -> (i32, i32) {
    %c0_i32 = arith.constant 0 : i32
    %c0_i32_0 = arith.constant 0 : i32
    %c0_i32_1 = arith.constant 0 : i32
    return %c0_i32, %c0_i32_0 : i32, i32
  }
  func.func @transform_3(%arg0: i32) -> (i32, i32, i32) {
    %c0_i32 = arith.constant 0 : i32
    %c0_i32_0 = arith.constant 0 : i32
    %c0_i32_1 = arith.constant 0 : i32
    return %arg0, %c0_i32, %c0_i32_0 : i32, i32, i32
  }
}

</mosaic_0001>

<bundles_post_ra>
// kernel: tpu_custom_call.1
= control target key start
LH: loop header
LB: loop body
LE: loop exit
PB: predicated region body
PF: predicated region fallthrough
CT: control target
= control target key end

     0   :  { %8 = vsyncpa [#allocation3], 0  ;;  %s296_s0 = inlined_call_operand.hbm [shape: f32[8,256], index: 0, kind: input, shape index: {}]   ;;  %s297_s1 = inlined_call_operand.hbm [shape: f32[1,256], index: 1, kind: input, shape index: {}]   ;;  %s298_s2 = inlined_call_operand.hbm [shape: f32[1,256], index: 2, kind: input, shape index: {}]   ;;  %s299_s3 = inlined_call_operand.hbm [shape: f32[1,1,128], index: 3, kind: output, shape index: {}]  }
   0x1   :  { %9 = vsyncpa [#allocation6], 0  ;;  %s27_s14 = sshll.u32 %s297_s1, 4  ;;  %s28_s14 = int_to_ptr.hbm [resolvable:$true] %s27_s14 }
   0x2   :  { %10 = vsyncpa [#allocation4], 0  ;;  %s258_s15 = smov [#allocation5]   ;;  %s16_s19 = sshll.u32 %s296_s0, 4  ;;  %s17_s19 = int_to_ptr.hbm [resolvable:$true] %s16_s19 }
   0x3   :  { %s29_s16 = sshll.u32 %s258_s15, 4  ;;  %s259_s20 = smov [#allocation2]   ;;  %s30_s16 = int_to_ptr.vmem [resolvable:$true] %s29_s16 }
   0x4   :  { %32 = dma.hbm_to_vmem [thread:$0]  %s28_s14, 32, %s30_s16, [#allocation6]  }
   0x5   :  { %s18_s21 = sshll.u32 %s259_s20, 4  ;;  %s38_s24 = sshll.u32 %s298_s2, 4  ;;  %s19_s21 = int_to_ptr.vmem [resolvable:$true] %s18_s21  ;;  %s39_s24 = int_to_ptr.hbm [resolvable:$true] %s38_s24 }
   0x6   :  { %21 = dma.hbm_to_vmem [thread:$0]  %s17_s19, 256, %s19_s21, [#allocation3]  }
   0x7   :  { %s260_s1 = smov [#allocation7]  }
   0x8   :  { %s40_s25 = sshll.u32 %s260_s1, 4  ;;  %s41_s25 = int_to_ptr.vmem [resolvable:$true] %s40_s25 }
   0x9   :  { %43 = dma.hbm_to_vmem [thread:$0]  %s39_s24, 32, %s41_s25, [#allocation6]  }
   0xa   :  { %252 = dma.done.wait [#allocation3], 256  }
   0xb   :  { %253 = vsyncadd [#allocation3], 4294967040 }
   0xc   :  { %254 = dma.done.wait [#allocation6], 64  }
   0xd   :  { %255 = vsyncadd [#allocation6], 4294967232  ;;  %v61_v0 = vld [vmem:[#allocation2] sm:$0xff]  ;;  %s261_s0 = smov 127   ;;  %s262_s26 = smov 112   ;;  %v62_v1 = vld [vmem:[#allocation2 + $0x8] sm:$0xff]  ;;  %v67_v2 = vlaneseq }
   0xe   :  { %72 = vrot.lane.b32.xlu1 %v61_v0, %s261_s0  ;;  %63 = vrot.lane.b32.xlu0 %v61_v0, %s262_s26  ;;  %v56_v6 = vld [vmem:[#allocation5] sm:$0x3]  ;;  %v57_v11 = vld [vmem:[#allocation7] sm:$0x3]  ;;  %s263_s27 = smov [#allocation8]   ;;  %s135_s7 = sshll.u32 %s299_s3, 4  ;;  %s136_s7 = int_to_ptr.hbm [resolvable:$true] %s135_s7 }
   0xf   :  { %v68_v5 = vand.u32 127, %v67_v2  ;;  %v82_v9 = vperm.slane %v56_v6, 0  ;;  %v83_v10 = vperm.slane %v56_v6, 1  ;;  %v91_v18 = vperm.slane %v57_v11, 0  ;;  %s133_s28 = sshll.u32 %s263_s27, 4  ;;  %s134_s28 = int_to_ptr.vmem [resolvable:$true] %s133_s28 }
  0x10   :  { %v92_v19 = vperm.slane %v57_v11, 1 }
  0x11   :  { %vm76_vm0 = vcmp.lt.s32.totalorder %v68_v5, 127  ;;  %vm69_vm1 = vcmp.lt.s32.totalorder %v68_v5, 112 }
  0x16   :  { %74 = vrot.lane.b32.xlu1 %v62_v1, %s261_s0  ;;  %65 = vrot.lane.b32.xlu0 %v62_v1, %s262_s26 }
  0x80   :  { %v73_v3 = vpop.permute.xlu1 %72  ;;  %v64_v4 = vpop.permute.xlu0 %63 }
  0x88   :  { %v75_v7 = vpop.permute.xlu1 %74  ;;  %v66_v8 = vpop.permute.xlu0 %65 }
  0x89   :  { %v77_v12 = vsel %vm76_vm0, %v73_v3, %v75_v7  ;;  %v78_v13 = vsel %vm76_vm0, %v75_v7, %v73_v3  ;;  %v70_v14 = vsel %vm69_vm1, %v64_v4, %v66_v8  ;;  %v71_v15 = vsel %vm69_vm1, %v66_v8, %v64_v4 }
  0x8a   :  { %v79_v16 = vsub.f32 %v70_v14, %v61_v0  ;;  %v80_v17 = vsub.f32 %v71_v15, %v62_v1  ;;  %v88_v20 = vsub.f32 %v77_v12, %v61_v0  ;;  %v89_v21 = vsub.f32 %v78_v13, %v62_v1 }
  0x8c   :  { %v86_v22 = vmul.f32 %v82_v9, %v79_v16  ;;  %v87_v23 = vmul.f32 %v83_v10, %v80_v17  ;;  %v95_v27 = vmul.f32 %v91_v18, %v88_v20  ;;  %v96_v28 = vmul.f32 %v92_v19, %v89_v21 }
  0x8e   :  { %v97_v24 = vmul.f32 %v86_v22, %v86_v22  ;;  %v98_v25 = vmul.f32 %v87_v23, %v87_v23  ;;  %v110_v29 = vmul.f32 %v95_v27, %v95_v27  ;;  %v111_v30 = vmul.f32 %v96_v28, %v96_v28 }
  0x90   :  { %v99_v26 = vadd.f32 %v98_v25, %v97_v24  ;;  %v112_v31 = vadd.f32 %v111_v30, %v110_v29 }
  0x92   :  { %100 = vadd.xlane.f32.xlu2 %v99_v26 }
  0x9a   :  { %113 = vadd.xlane.f32.xlu2 %v112_v31 }
 0x105   :  { %v101_v32 = vpop.xlane.xlu2 %100 }
 0x106   :  { %v102_v33 = vrot.slane %v101_v32, 4 }
 0x108   :  { %v103_v34 = vadd.f32 %v102_v33, %v101_v32 }
 0x10a   :  { %v104_v35 = vrot.slane %v103_v34, 2 }
 0x10c   :  { %v105_v36 = vadd.f32 %v104_v35, %v103_v34 }
 0x10d   :  { %v114_v37 = vpop.xlane.xlu2 %113 }
 0x10e   :  { %v115_v38 = vrot.slane %v114_v37, 4  ;;  %v106_v39 = vrot.slane %v105_v36, 1 }
 0x110   :  { %v116_v40 = vadd.f32 %v115_v38, %v114_v37  ;;  %v107_v41 = vadd.f32 %v106_v39, %v105_v36 }
 0x112   :  { %v117_v42 = vrot.slane %v116_v40, 2  ;;  %146 = vpush %v107_v41 }
 0x114   :  { %v118_v43 = vadd.f32 %v117_v42, %v116_v40 }
 0x116   :  { %v119_v44 = vrot.slane %v118_v43, 1 }
 0x118   :  { %v120_v45 = vadd.f32 %v119_v44, %v118_v43 }
 0x11a   :  { %148 = vpush %v120_v45 }
 0x143   :  { %s147_s2 = spop %146 }
 0x144   :  { %s123_s29 = smul.f32 0.0010416667, %s147_s2 }
 0x14b   :  { %s149_s30 = spop %148 }
 0x14c   :  { %s124_s4 = smul.f32 0.0010416667, %s149_s30 }
 0x14e   :  { %s125_s8 = sadd.f32 %s124_s4, %s123_s29 }
 0x150   :  { %v126_v46 = vstv %s125_s8 }
 0x151   :  { %127 = vst [vmem:[#allocation8] sm:$0x1] %v126_v46 }
 0x152   :  { %138 = dma.vmem_to_hbm [thread:$0]  %s134_s28, 16, %s136_s7, [#allocation4]  }
 0x153   :  { %256 = dma.done.wait [#allocation4], 16  }
 0x154   :  { %257 = vsyncadd [#allocation4], 4294967280 }
 0x155   :  { %143 = vsyncpa [#allocation3], 1 }
 0x156   :  { %144 = vsyncpa [#allocation6], 1 }
 0x157   :  { %145 = vsyncpa [#allocation4], 1 }

</bundles_post_ra>
